<compile_context>
chip_gen: v7x
topology: tpu7x:2x2x1
jax: 0.10.0
libtpu: 0.0.40
codegen_flags: <defaults>
</compile_context>

<pallas_src>
import functools

import jax
import jax.numpy as jnp
from jax import lax
from jax.experimental import pallas as pl
from jax.experimental.pallas import tpu as pltpu


# -----------------------------------------------------------------------------
# Helpers: chunk sizing + scoped-VMEM limits.
# -----------------------------------------------------------------------------
def _largest_divisor_leq(n, cap):
    cap = max(1, min(int(cap), int(n)))
    for t in range(cap, 0, -1):
        if n % t == 0:
            return t
    return 1


def _vmem_limit(byte_estimate):
    # Explicit scoped-VMEM request: 4x headroom over the static estimate,
    # never below the v5e default-ish floor, capped under v7x's 64 MiB/TC.
    return int(min(max(4 * byte_estimate, 32 << 20), 56 << 20))


def _ring_shift(h):
    """h @ W_rec for ESNMultiringCell == scale * cyclic shift of h along lanes."""
    R = h.shape[-1]
    if R % 128 == 0:
        # Lane-dense reservoir: guaranteed XLU lane rotate (free vs. the VPU).
        return pltpu.roll(h, 1, 1)
    # Small / non-lane-aligned R (e.g. the toy test): concat-of-slices path.
    return jnp.roll(h, 1, axis=-1)


# -----------------------------------------------------------------------------
# Kernel 1: bidirectional leaky-ESN recurrence.
#   h_t = (1 - a) * h_{t-1} + a * tanh(x_t @ W_in + h_{t-1} @ W_rec + b)
# grid = (direction, sequence_chunk); direction 0 = forward, 1 = backward.
# The backward direction walks chunks (and time within a chunk) in reverse, so
# out[1, t] is already aligned to time t as in ESNBase (bidirectional).
# -----------------------------------------------------------------------------
def _esn_kernel(x_ref, win_ref, b_ref, out_ref, h_sc, *,
                leak_f, leak_b, scale_f, scale_b):
    d = pl.program_id(0)              # 0 = forward direction, 1 = backward
    T = x_ref.shape[0]                # timesteps in this chunk

    leak = jnp.where(d == 0, jnp.float32(leak_f), jnp.float32(leak_b))
    scale = jnp.where(d == 0, jnp.float32(scale_f), jnp.float32(scale_b))
    one_minus_leak = 1.0 - leak       # hoisted out of the recurrence loop

    @pl.when(pl.program_id(1) == 0)   # first chunk of this direction: reset state
    def _():
        h_sc[...] = jnp.zeros_like(h_sc)

    # Hoisted input projection, staged directly in the output block (no extra
    # (T, B, R) scratch): out_ref temporarily holds x_t @ W_in + b; each step
    # then overwrites its own row with the new hidden state.
    # TODO(synk): if states are emitted in bf16, keep an f32 staging scratch here.
    out_ref[...] = (jnp.einsum('tbi,ir->tbr', x_ref[...], win_ref[...],
                               preferred_element_type=jnp.float32)
                    + b_ref[...]).astype(out_ref.dtype)

    def step(s, carry):
        # forward walks local time 0..T-1, backward walks T-1..0
        t = s + d * (T - 1 - 2 * s)
        h = h_sc[...]
        # ESNMultiringCell: W_rec == scale * cyclic permutation, so
        # h @ W_rec == scale * roll(h, 1)  (cheap lane shift, no MXU in the loop).
        pre = out_ref[t].astype(jnp.float32) + scale * _ring_shift(h)
        h_new = one_minus_leak * h + leak * jnp.tanh(pre)
        h_sc[...] = h_new
        out_ref[t] = h_new.astype(out_ref.dtype)
        return carry

    # Full unroll when small, partial unroll otherwise (scheduler visibility).
    lax.fori_loop(0, T, step, 0, unroll=(True if T <= 32 else 8))


def esn_forward(x, p, *, seq_chunk=512, chunk_budget_bytes=24 << 20):
    """x: (S, B, I) -> states: (2, S, B, R) stacked [forward, backward]."""
    S, B, I = x.shape
    R = p["win_f"].shape[1]

    # Per-timestep live VMEM (f32): double-buffered input (B*I) + double-buffered
    # output (B*R).  Size the chunk against the budget (v7x has only 64 MiB/TC),
    # then snap to the largest divisor of S so there is never a whole-sequence
    # fallback block.
    bytes_per_t = 4 * B * (2 * I + 2 * R)
    t_cap = max(1, chunk_budget_bytes // max(bytes_per_t, 1))
    T = _largest_divisor_leq(S, min(seq_chunk, t_cap))
    nc = S // T

    win = jnp.stack([p["win_f"], p["win_b"]], axis=0)     # (2, I, R)
    bias = jnp.stack([p["b_f"], p["b_b"]], axis=0)        # (2, 1, R)

    kern = functools.partial(
        _esn_kernel,
        leak_f=float(p["leak_f"]), leak_b=float(p["leak_b"]),
        scale_f=float(p["scale_rec_f"]), scale_b=float(p["scale_rec_b"]))

    def time_blk(d, c):                # fwd chunks walk 0..nc-1, bwd walk nc-1..0
        return c + d * (nc - 1 - 2 * c)

    est = (2 * T * B * I * 4          # double-buffered input block
           + 2 * T * B * R * 4        # double-buffered output block
           + 2 * (I * R + R) * 4      # weights + bias (both directions)
           + B * R * 4)               # carried hidden state

    return pl.pallas_call(
        kern,
        grid=(2, nc),                  # (direction, sequence chunk)
        in_specs=[
            pl.BlockSpec((T, B, I), lambda d, c: (time_blk(d, c), 0, 0)),
            pl.BlockSpec((None, I, R), lambda d, c: (d, 0, 0)),
            pl.BlockSpec((None, 1, R), lambda d, c: (d, 0, 0)),
        ],
        out_specs=pl.BlockSpec((None, T, B, R),
                               lambda d, c: (d, time_blk(d, c), 0, 0)),
        out_shape=jax.ShapeDtypeStruct((2, S, B, R), jnp.float32),
        scratch_shapes=[pltpu.VMEM((B, R), jnp.float32)],     # carried hidden state
        compiler_params=pltpu.CompilerParams(
            dimension_semantics=("parallel", "arbitrary"),
            vmem_limit_bytes=_vmem_limit(est)),
    )(x, win, bias)


# -----------------------------------------------------------------------------
# Kernel 2: ff1 + tanh + LinSelfAttention + MLP readout, tiled over the sequence
# with an online softmax (flash pattern).
#   H      = tanh(states @ W1 + b1)                    (S, B, A)
#   alpha  = softmax_over_seq(H @ Wa)                  (S, B, r)
#   ctx    = sum_s alpha[s] * H[s]  (per head)         (B, r, A)
#   out    = MLP(flatten(ctx))                         (B, O)
# -----------------------------------------------------------------------------
def _attn_readout_kernel(*refs, n_hidden):
    n_mlp = 2 * n_hidden + 2
    states_ref, w1_ref, b1_ref, wa_ref = refs[:4]
    mlp_refs = refs[4:4 + n_mlp]
    out_ref = refs[4 + n_mlp]
    m_sc, l_sc, ctx_sc = refs[4 + n_mlp + 1:]

    c = pl.program_id(0)
    B = states_ref.shape[2]
    A = w1_ref.shape[2]
    r = wa_ref.shape[1]

    @pl.when(c == 0)
    def _():
        m_sc[...] = jnp.full_like(m_sc, -jnp.inf)
        l_sc[...] = jnp.zeros_like(l_sc)
        ctx_sc[...] = jnp.zeros_like(ctx_sc)

    # ff1 + tanh on this sequence chunk.  The contraction over the
    # [forward; backward] feature halves is split, so the stacked states never
    # need concatenation; each term is one lane-dense (Ts*B, R) x (R, A) matmul.
    h = jnp.tanh(
        jnp.einsum('sbr,ra->sba', states_ref[0], w1_ref[0],
                   preferred_element_type=jnp.float32)
        + jnp.einsum('sbr,ra->sba', states_ref[1], w1_ref[1],
                     preferred_element_type=jnp.float32)
        + b1_ref[...])                                          # (Ts, B, A)

    # LinSelfAttention scores for this chunk.
    scores = jnp.einsum('sba,ar->sbr', h, wa_ref[...],
                        preferred_element_type=jnp.float32)     # (Ts, B, r)

    # Online softmax over the sequence axis (running max / sum, rescaled ctx).
    m_new = jnp.maximum(m_sc[...], jnp.max(scores, axis=0))     # (B, r)
    corr = jnp.exp(m_sc[...] - m_new)                           # (B, r)
    p = jnp.exp(scores - m_new[None])                           # (Ts, B, r)
    l_sc[...] = corr * l_sc[...] + jnp.sum(p, axis=0)
    # MXU contraction over the chunk — no (S, B, r, A) broadcast temporary.
    ctx_sc[...] = (corr[:, :, None] * ctx_sc[...]
                   + jnp.einsum('sbr,sba->bra', p, h,
                                preferred_element_type=jnp.float32))
    m_sc[...] = m_new

    @pl.when(c == pl.num_programs(0) - 1)
    def _():
        ctx = ctx_sc[...] / l_sc[...][:, :, None]               # (B, r, A)
        # MLP readout.  Dropout with the module default p=0 is the identity.
        # TODO(synk): dropout with p > 0 would need pltpu.prng_* masking.
        s = ctx.reshape(B, r * A)      # heads-major flatten (LinSelfAttention order)
        idx = 0
        for _ in range(n_hidden):
            w = mlp_refs[idx][...]
            bb = mlp_refs[idx + 1][...]
            idx += 2
            s = jnp.maximum(jnp.dot(s, w, preferred_element_type=jnp.float32) + bb,
                            0.0)
        w_out = mlp_refs[idx][...]
        b_out = mlp_refs[idx + 1][...]
        out_ref[...] = (jnp.dot(s, w_out, preferred_element_type=jnp.float32)
                        + b_out).astype(out_ref.dtype)


def attn_readout_forward(states, p, *, seq_chunk=256, chunk_budget_bytes=24 << 20):
    """states: (2, S, B, R) -> (B, output_size)."""
    _, S, B, R = states.shape
    A = p["w1"].shape[1]
    r = p["wa"].shape[1]
    # Row-major split of the (2R, A) ff1 weight: rows [0:R) act on forward states,
    # rows [R:2R) on backward states (matches concat([fwd, bwd], axis=-1)).
    w1 = p["w1"].reshape(2, R, A)
    hidden = p["mlp_hidden"]
    w_out, b_out = p["mlp_out"]
    O = w_out.shape[1]

    # Chunk the sequence: double-buffered (2, Ts, B, R) states block plus the
    # (Ts, B, A) / (Ts, B, r) intermediates must fit the budget.
    bytes_per_t = 4 * B * (2 * 2 * R + A + 2 * r)
    t_cap = max(1, chunk_budget_bytes // max(bytes_per_t, 1))
    Ts = _largest_divisor_leq(S, min(seq_chunk, t_cap))
    nc = S // Ts

    args = [states, w1, p["b1"], p["wa"]]
    in_specs = [
        pl.BlockSpec((2, Ts, B, R), lambda c: (0, c, 0, 0)),
        pl.BlockSpec((2, R, A), lambda c: (0, 0, 0)),
        pl.BlockSpec((1, A), lambda c: (0, 0)),
        pl.BlockSpec((A, r), lambda c: (0, 0)),
    ]
    for (w, bb) in hidden:
        args += [w, bb]
        in_specs += [pl.BlockSpec(w.shape, lambda c: (0, 0)),
                     pl.BlockSpec(bb.shape, lambda c: (0, 0))]
    args += [w_out, b_out]
    in_specs += [pl.BlockSpec(w_out.shape, lambda c: (0, 0)),
                 pl.BlockSpec(b_out.shape, lambda c: (0, 0))]

    est = (2 * 2 * Ts * B * R * 4      # double-buffered states block
           + Ts * B * (A + r) * 4      # h + scores intermediates
           + (2 * R * A + A + A * r) * 4
           + B * r * (A + 2) * 4       # accumulators
           + sum(int(w.size + bb.size) * 4 for (w, bb) in hidden)
           + int(w_out.size + b_out.size) * 4)

    kern = functools.partial(_attn_readout_kernel, n_hidden=len(hidden))
    return pl.pallas_call(
        kern,
        grid=(nc,),
        in_specs=in_specs,
        out_specs=pl.BlockSpec((B, O), lambda c: (0, 0)),
        out_shape=jax.ShapeDtypeStruct((B, O), jnp.float32),
        scratch_shapes=[pltpu.VMEM((B, r), jnp.float32),        # running max
                        pltpu.VMEM((B, r), jnp.float32),        # running sum
                        pltpu.VMEM((B, r, A), jnp.float32)],    # ctx accumulator
        compiler_params=pltpu.CompilerParams(
            dimension_semantics=("arbitrary",),
            vmem_limit_bytes=_vmem_limit(est)),
    )(*args)


# -----------------------------------------------------------------------------
# Parameter init (deterministic, synthetic) + full forward.
# -----------------------------------------------------------------------------
def init_params(key, *, input_size, output_size, reservoir_size,
                attention_hidden_size, attention_heads,
                mlp_n_hidden, mlp_hidden_size,
                scale_rec=1.0, scale_in=1.0, density_in=1.0, leaking_rate=1.0):
    ks = jax.random.split(key, 12)

    def make_win(k_w, k_m):
        w = jax.random.uniform(k_w, (input_size, reservoir_size),
                               minval=-scale_in, maxval=scale_in)
        mask = (jax.random.uniform(k_m, w.shape) < density_in).astype(w.dtype)
        return w * mask

    n_res_feat = 2 * reservoir_size          # n_layers=1, bidirectional
    bound_ff1 = 1.0 / float(n_res_feat) ** 0.5
    params = {
        "win_f": make_win(ks[0], ks[1]),
        "win_b": make_win(ks[2], ks[3]),
        "b_f": jax.random.uniform(ks[4], (1, reservoir_size),
                                  minval=-scale_in, maxval=scale_in),
        "b_b": jax.random.uniform(ks[5], (1, reservoir_size),
                                  minval=-scale_in, maxval=scale_in),
        # ESNMultiringCell recurrent matrix == contractivity_coeff * cyclic
        # permutation; only the scalar coefficient is needed in the kernel
        # (h @ W_rec == coeff * roll(h, 1)).
        "scale_rec_f": float(scale_rec),
        "scale_rec_b": float(scale_rec),
        "leak_f": float(leaking_rate),
        "leak_b": float(leaking_rate),
        "w1": jax.random.uniform(ks[6], (n_res_feat, attention_hidden_size),
                                 minval=-bound_ff1, maxval=bound_ff1),
        "b1": jax.random.uniform(ks[7], (1, attention_hidden_size),
                                 minval=-bound_ff1, maxval=bound_ff1),
        "wa": 0.1 * jax.random.normal(ks[8], (attention_hidden_size, attention_heads)),
    }
    mlp_in = attention_heads * attention_hidden_size
    hidden = []
    k_mlp = jax.random.split(ks[9], 2 * max(mlp_n_hidden, 1))
    in_f = mlp_in
    for i in range(mlp_n_hidden):
        bound = 1.0 / float(in_f) ** 0.5
        w = jax.random.uniform(k_mlp[2 * i], (in_f, mlp_hidden_size),
                               minval=-bound, maxval=bound)
        b = jax.random.uniform(k_mlp[2 * i + 1], (1, mlp_hidden_size),
                               minval=-bound, maxval=bound)
        hidden.append((w, b))
        in_f = mlp_hidden_size
    bound = 1.0 / float(in_f) ** 0.5
    w_out = jax.random.uniform(ks[10], (in_f, output_size), minval=-bound, maxval=bound)
    b_out = jax.random.uniform(ks[11], (1, output_size), minval=-bound, maxval=bound)
    params["mlp_hidden"] = hidden
    params["mlp_out"] = (w_out, b_out)
    return params


def leaky_esn_attention_forward(params, x):
    """x: (seq_len, batch, input_size) -> (batch, output_size)."""
    states = esn_forward(x, params)                # (2, S, B, R) bidirectional states
    return attn_readout_forward(states, params)    # (B, output_size)


if __name__ == "__main__":
    SEQ, BATCH, IN = 8, 2, 4
    RES, ATTN_H, HEADS = 32, 32, 1
    MLP_N_HIDDEN, MLP_H, OUT = 1, 32, 3

    key = jax.random.PRNGKey(0)
    k_params, k_x = jax.random.split(key)
    params = init_params(
        k_params,
        input_size=IN, output_size=OUT, reservoir_size=RES,
        attention_hidden_size=ATTN_H, attention_heads=HEADS,
        mlp_n_hidden=MLP_N_HIDDEN, mlp_hidden_size=MLP_H,
    )
    x = jax.random.normal(k_x, (SEQ, BATCH, IN), dtype=jnp.float32)

    out = leaky_esn_attention_forward(params, x)
    jax.block_until_ready(out)
    assert out.shape == (BATCH, OUT)
    print("KERNEL_OK")
</pallas_src>

<mosaic_0001>
module attributes {stable_mosaic.version = 11 : i64} {
  func.func @_esn_kernel(%arg0: i32, %arg1: i32, %arg2: memref<8x2x4xf32, #tpu.memory_space<vmem>>, %arg3: memref<1x4x32xf32, #tpu.memory_space<vmem>>, %arg4: memref<1x1x32xf32, #tpu.memory_space<vmem>>, %arg5: memref<1x8x2x32xf32, #tpu.memory_space<vmem>>, %arg6: memref<2x32xf32, #tpu.memory_space<vmem>>) attributes {dimension_semantics = [#tpu.dimension_semantics<parallel>, #tpu.dimension_semantics<arbitrary>], iteration_bounds = array<i64: 2, 1>, scalar_prefetch = 0 : i64, scratch_operands = 1 : i64, tpu.core_type = #tpu.core_type<tc>, window_params = [{transform_indices = @transform_0, window_bounds = array<i64: 8, 2, 4>}, {transform_indices = @transform_1, window_bounds = array<i64: 1, 4, 32>}, {transform_indices = @transform_2, window_bounds = array<i64: 1, 1, 32>}, {transform_indices = @transform_3, window_bounds = array<i64: 1, 8, 2, 32>}]} {
    %c0_i32 = arith.constant 0 : i32
    %0 = arith.cmpi eq, %arg0, %c0_i32 : i32
    %cst = arith.constant 1.000000e+00 : f32
    %cst_0 = arith.constant 1.000000e+00 : f32
    %1 = arith.select %0, %cst, %cst_0 : f32
    %c0_i32_1 = arith.constant 0 : i32
    %2 = arith.cmpi eq, %arg0, %c0_i32_1 : i32
    %cst_2 = arith.constant 1.000000e+00 : f32
    %cst_3 = arith.constant 1.000000e+00 : f32
    %3 = arith.select %2, %cst_2, %cst_3 : f32
    %cst_4 = arith.constant 1.000000e+00 : f32
    %4 = arith.subf %cst_4, %1 : f32
    %c0_i32_5 = arith.constant 0 : i32
    %5 = arith.cmpi eq, %arg1, %c0_i32_5 : i32
    %6 = arith.extui %5 : i1 to i32
    %c0_i32_6 = arith.constant 0 : i32
    %7 = arith.cmpi ne, %6, %c0_i32_6 : i32
    scf.if %7 {
      %cst_117 = arith.constant 0.000000e+00 : f32
      %220 = vector.broadcast %cst_117 : f32 to vector<2x32xf32>
      %c0_118 = arith.constant 0 : index
      %c0_119 = arith.constant 0 : index
      %221 = vector.load %arg6[%c0_118, %c0_119] : memref<2x32xf32, #tpu.memory_space<vmem>>, vector<2x32xf32>
      tpu.vector_store %arg6[%c0_118, %c0_119], %220 {strides = array<i32>} : memref<2x32xf32, #tpu.memory_space<vmem>>, vector<2x32xf32>,
    } else {
    }
    %c0 = arith.constant 0 : index
    %c0_7 = arith.constant 0 : index
    %c0_8 = arith.constant 0 : index
    %8 = vector.load %arg2[%c0, %c0_7, %c0_8] : memref<8x2x4xf32, #tpu.memory_space<vmem>>, vector<8x2x4xf32>
    %c0_9 = arith.constant 0 : index
    %c0_10 = arith.constant 0 : index
    %c0_11 = arith.constant 0 : index
    %9 = vector.load %arg3[%c0_9, %c0_10, %c0_11] : memref<1x4x32xf32, #tpu.memory_space<vmem>>, vector<1x4x32xf32>
    %10 = vector.shape_cast %9 : vector<1x4x32xf32> to vector<4x32xf32>
    "tpu.trace_start"() <{level = 10 : i32, message = "tbi,ir->tbr"}> : () -> ()
    %cst_12 = arith.constant dense<0.000000e+00> : vector<8x2x32xf32>
    %11 = tpu.matmul %8, %10, %cst_12 {dimension_numbers = #tpu.dot_dimension_numbers<[2], [0], [0, 1], [1], [0, 0, 0, 1, 1, 1], [], []>} : vector<8x2x4xf32>, vector<4x32xf32>, vector<8x2x32xf32> -> vector<8x2x32xf32>
    "tpu.trace_stop"() : () -> ()
    %c0_13 = arith.constant 0 : index
    %c0_14 = arith.constant 0 : index
    %c0_15 = arith.constant 0 : index
    %12 = vector.load %arg4[%c0_13, %c0_14, %c0_15] : memref<1x1x32xf32, #tpu.memory_space<vmem>>, vector<1x1x32xf32>
    %13 = vector.shape_cast %12 : vector<1x1x32xf32> to vector<1x32xf32>
    %14 = vector.shape_cast %13 : vector<1x32xf32> to vector<1x1x32xf32>
    %15 = vector.broadcast %14 : vector<1x1x32xf32> to vector<8x2x32xf32>
    %16 = arith.addf %11, %15 : vector<8x2x32xf32>
    %c0_16 = arith.constant 0 : index
    %c0_17 = arith.constant 0 : index
    %c0_18 = arith.constant 0 : index
    %c0_19 = arith.constant 0 : index
    %17 = vector.load %arg5[%c0_16, %c0_17, %c0_18, %c0_19] : memref<1x8x2x32xf32, #tpu.memory_space<vmem>>, vector<1x8x2x32xf32>
    %18 = vector.shape_cast %17 : vector<1x8x2x32xf32> to vector<8x2x32xf32>
    %19 = vector.shape_cast %16 : vector<8x2x32xf32> to vector<1x8x2x32xf32>
    tpu.vector_store %arg5[%c0_16, %c0_17, %c0_18, %c0_19], %19 {strides = array<i32>} : memref<1x8x2x32xf32, #tpu.memory_space<vmem>>, vector<1x8x2x32xf32>,
    %c0_i32_20 = arith.constant 0 : i32
    %c2_i32 = arith.constant 2 : i32
    %20 = arith.muli %c2_i32, %c0_i32_20 : i32
    %c7_i32 = arith.constant 7 : i32
    %21 = arith.subi %c7_i32, %20 : i32
    %22 = arith.muli %arg0, %21 : i32
    %23 = arith.addi %c0_i32_20, %22 : i32
    %c0_21 = arith.constant 0 : index
    %c0_22 = arith.constant 0 : index
    %24 = vector.load %arg6[%c0_21, %c0_22] : memref<2x32xf32, #tpu.memory_space<vmem>>, vector<2x32xf32>
    %c0_23 = arith.constant 0 : index
    %25 = arith.index_cast %23 : i32 to index
    %c0_24 = arith.constant 0 : index
    %c0_25 = arith.constant 0 : index
    %26 = vector.load %arg5[%c0_23, %25, %c0_24, %c0_25] : memref<1x8x2x32xf32, #tpu.memory_space<vmem>>, vector<1x1x2x32xf32>
    %27 = vector.shape_cast %26 : vector<1x1x2x32xf32> to vector<2x32xf32>
    %28 = vector.extract_strided_slice %24 {offsets = [0, 31], sizes = [2, 1], strides = [1, 1]} : vector<2x32xf32> to vector<2x1xf32>
    %29 = vector.extract_strided_slice %24 {offsets = [0, 0], sizes = [2, 31], strides = [1, 1]} : vector<2x32xf32> to vector<2x31xf32>
    %30 = tpu.concatenate %28, %29 in 1 : vector<2x1xf32>, vector<2x31xf32> -> vector<2x32xf32>
    %31 = vector.broadcast %3 : f32 to vector<2x32xf32>
    %32 = arith.mulf %31, %30 : vector<2x32xf32>
    %33 = arith.addf %27, %32 : vector<2x32xf32>
    %34 = vector.broadcast %4 : f32 to vector<2x32xf32>
    %35 = arith.mulf %34, %24 : vector<2x32xf32>
    %36 = math.tanh %33 : vector<2x32xf32>
    %37 = vector.broadcast %1 : f32 to vector<2x32xf32>
    %38 = arith.mulf %37, %36 : vector<2x32xf32>
    %39 = arith.addf %35, %38 : vector<2x32xf32>
    %c0_26 = arith.constant 0 : index
    %c0_27 = arith.constant 0 : index
    %40 = vector.load %arg6[%c0_26, %c0_27] : memref<2x32xf32, #tpu.memory_space<vmem>>, vector<2x32xf32>
    tpu.vector_store %arg6[%c0_26, %c0_27], %39 {strides = array<i32>} : memref<2x32xf32, #tpu.memory_space<vmem>>, vector<2x32xf32>,
    %c0_28 = arith.constant 0 : index
    %41 = arith.index_cast %23 : i32 to index
    %c0_29 = arith.constant 0 : index
    %c0_30 = arith.constant 0 : index
    %42 = vector.load %arg5[%c0_28, %41, %c0_29, %c0_30] : memref<1x8x2x32xf32, #tpu.memory_space<vmem>>, vector<1x1x2x32xf32>
    %43 = vector.shape_cast %42 : vector<1x1x2x32xf32> to vector<2x32xf32>
    %44 = vector.shape_cast %39 : vector<2x32xf32> to vector<1x1x2x32xf32>
    tpu.vector_store %arg5[%c0_28, %41, %c0_29, %c0_30], %44 {strides = array<i32>} : memref<1x8x2x32xf32, #tpu.memory_space<vmem>>, vector<1x1x2x32xf32>,
    %c1_i32 = arith.constant 1 : i32
    %c2_i32_31 = arith.constant 2 : i32
    %45 = arith.muli %c2_i32_31, %c1_i32 : i32
    %c7_i32_32 = arith.constant 7 : i32
    %46 = arith.subi %c7_i32_32, %45 : i32
    %47 = arith.muli %arg0, %46 : i32
    %48 = arith.addi %c1_i32, %47 : i32
    %c0_33 = arith.constant 0 : index
    %c0_34 = arith.constant 0 : index
    %49 = vector.load %arg6[%c0_33, %c0_34] : memref<2x32xf32, #tpu.memory_space<vmem>>, vector<2x32xf32>
    %c0_35 = arith.constant 0 : index
    %50 = arith.index_cast %48 : i32 to index
    %c0_36 = arith.constant 0 : index
    %c0_37 = arith.constant 0 : index
    %51 = vector.load %arg5[%c0_35, %50, %c0_36, %c0_37] : memref<1x8x2x32xf32, #tpu.memory_space<vmem>>, vector<1x1x2x32xf32>
    %52 = vector.shape_cast %51 : vector<1x1x2x32xf32> to vector<2x32xf32>
    %53 = vector.extract_strided_slice %49 {offsets = [0, 31], sizes = [2, 1], strides = [1, 1]} : vector<2x32xf32> to vector<2x1xf32>
    %54 = vector.extract_strided_slice %49 {offsets = [0, 0], sizes = [2, 31], strides = [1, 1]} : vector<2x32xf32> to vector<2x31xf32>
    %55 = tpu.concatenate %53, %54 in 1 : vector<2x1xf32>, vector<2x31xf32> -> vector<2x32xf32>
    %56 = vector.broadcast %3 : f32 to vector<2x32xf32>
    %57 = arith.mulf %56, %55 : vector<2x32xf32>
    %58 = arith.addf %52, %57 : vector<2x32xf32>
    %59 = vector.broadcast %4 : f32 to vector<2x32xf32>
    %60 = arith.mulf %59, %49 : vector<2x32xf32>
    %61 = math.tanh %58 : vector<2x32xf32>
    %62 = vector.broadcast %1 : f32 to vector<2x32xf32>
    %63 = arith.mulf %62, %61 : vector<2x32xf32>
    %64 = arith.addf %60, %63 : vector<2x32xf32>
    %c0_38 = arith.constant 0 : index
    %c0_39 = arith.constant 0 : index
    %65 = vector.load %arg6[%c0_38, %c0_39] : memref<2x32xf32, #tpu.memory_space<vmem>>, vector<2x32xf32>
    tpu.vector_store %arg6[%c0_38, %c0_39], %64 {strides = array<i32>} : memref<2x32xf32, #tpu.memory_space<vmem>>, vector<2x32xf32>,
    %c0_40 = arith.constant 0 : index
    %66 = arith.index_cast %48 : i32 to index
    %c0_41 = arith.constant 0 : index
    %c0_42 = arith.constant 0 : index
    %67 = vector.load %arg5[%c0_40, %66, %c0_41, %c0_42] : memref<1x8x2x32xf32, #tpu.memory_space<vmem>>, vector<1x1x2x32xf32>
    %68 = vector.shape_cast %67 : vector<1x1x2x32xf32> to vector<2x32xf32>
    %69 = vector.shape_cast %64 : vector<2x32xf32> to vector<1x1x2x32xf32>
    tpu.vector_store %arg5[%c0_40, %66, %c0_41, %c0_42], %69 {strides = array<i32>} : memref<1x8x2x32xf32, #tpu.memory_space<vmem>>, vector<1x1x2x32xf32>,
    %c2_i32_43 = arith.constant 2 : i32
    %c2_i32_44 = arith.constant 2 : i32
    %70 = arith.muli %c2_i32_44, %c2_i32_43 : i32
    %c7_i32_45 = arith.constant 7 : i32
    %71 = arith.subi %c7_i32_45, %70 : i32
    %72 = arith.muli %arg0, %71 : i32
    %73 = arith.addi %c2_i32_43, %72 : i32
    %c0_46 = arith.constant 0 : index
    %c0_47 = arith.constant 0 : index
    %74 = vector.load %arg6[%c0_46, %c0_47] : memref<2x32xf32, #tpu.memory_space<vmem>>, vector<2x32xf32>
    %c0_48 = arith.constant 0 : index
    %75 = arith.index_cast %73 : i32 to index
    %c0_49 = arith.constant 0 : index
    %c0_50 = arith.constant 0 : index
    %76 = vector.load %arg5[%c0_48, %75, %c0_49, %c0_50] : memref<1x8x2x32xf32, #tpu.memory_space<vmem>>, vector<1x1x2x32xf32>
    %77 = vector.shape_cast %76 : vector<1x1x2x32xf32> to vector<2x32xf32>
    %78 = vector.extract_strided_slice %74 {offsets = [0, 31], sizes = [2, 1], strides = [1, 1]} : vector<2x32xf32> to vector<2x1xf32>
    %79 = vector.extract_strided_slice %74 {offsets = [0, 0], sizes = [2, 31], strides = [1, 1]} : vector<2x32xf32> to vector<2x31xf32>
    %80 = tpu.concatenate %78, %79 in 1 : vector<2x1xf32>, vector<2x31xf32> -> vector<2x32xf32>
    %81 = vector.broadcast %3 : f32 to vector<2x32xf32>
    %82 = arith.mulf %81, %80 : vector<2x32xf32>
    %83 = arith.addf %77, %82 : vector<2x32xf32>
    %84 = vector.broadcast %4 : f32 to vector<2x32xf32>
    %85 = arith.mulf %84, %74 : vector<2x32xf32>
    %86 = math.tanh %83 : vector<2x32xf32>
    %87 = vector.broadcast %1 : f32 to vector<2x32xf32>
    %88 = arith.mulf %87, %86 : vector<2x32xf32>
    %89 = arith.addf %85, %88 : vector<2x32xf32>
    %c0_51 = arith.constant 0 : index
    %c0_52 = arith.constant 0 : index
    %90 = vector.load %arg6[%c0_51, %c0_52] : memref<2x32xf32, #tpu.memory_space<vmem>>, vector<2x32xf32>
    tpu.vector_store %arg6[%c0_51, %c0_52], %89 {strides = array<i32>} : memref<2x32xf32, #tpu.memory_space<vmem>>, vector<2x32xf32>,
    %c0_53 = arith.constant 0 : index
    %91 = arith.index_cast %73 : i32 to index
    %c0_54 = arith.constant 0 : index
    %c0_55 = arith.constant 0 : index
    %92 = vector.load %arg5[%c0_53, %91, %c0_54, %c0_55] : memref<1x8x2x32xf32, #tpu.memory_space<vmem>>, vector<1x1x2x32xf32>
    %93 = vector.shape_cast %92 : vector<1x1x2x32xf32> to vector<2x32xf32>
    %94 = vector.shape_cast %89 : vector<2x32xf32> to vector<1x1x2x32xf32>
    tpu.vector_store %arg5[%c0_53, %91, %c0_54, %c0_55], %94 {strides = array<i32>} : memref<1x8x2x32xf32, #tpu.memory_space<vmem>>, vector<1x1x2x32xf32>,
    %c3_i32 = arith.constant 3 : i32
    %c2_i32_56 = arith.constant 2 : i32
    %95 = arith.muli %c2_i32_56, %c3_i32 : i32
    %c7_i32_57 = arith.constant 7 : i32
    %96 = arith.subi %c7_i32_57, %95 : i32
    %97 = arith.muli %arg0, %96 : i32
    %98 = arith.addi %c3_i32, %97 : i32
    %c0_58 = arith.constant 0 : index
    %c0_59 = arith.constant 0 : index
    %99 = vector.load %arg6[%c0_58, %c0_59] : memref<2x32xf32, #tpu.memory_space<vmem>>, vector<2x32xf32>
    %c0_60 = arith.constant 0 : index
    %100 = arith.index_cast %98 : i32 to index
    %c0_61 = arith.constant 0 : index
    %c0_62 = arith.constant 0 : index
    %101 = vector.load %arg5[%c0_60, %100, %c0_61, %c0_62] : memref<1x8x2x32xf32, #tpu.memory_space<vmem>>, vector<1x1x2x32xf32>
    %102 = vector.shape_cast %101 : vector<1x1x2x32xf32> to vector<2x32xf32>
    %103 = vector.extract_strided_slice %99 {offsets = [0, 31], sizes = [2, 1], strides = [1, 1]} : vector<2x32xf32> to vector<2x1xf32>
    %104 = vector.extract_strided_slice %99 {offsets = [0, 0], sizes = [2, 31], strides = [1, 1]} : vector<2x32xf32> to vector<2x31xf32>
    %105 = tpu.concatenate %103, %104 in 1 : vector<2x1xf32>, vector<2x31xf32> -> vector<2x32xf32>
    %106 = vector.broadcast %3 : f32 to vector<2x32xf32>
    %107 = arith.mulf %106, %105 : vector<2x32xf32>
    %108 = arith.addf %102, %107 : vector<2x32xf32>
    %109 = vector.broadcast %4 : f32 to vector<2x32xf32>
    %110 = arith.mulf %109, %99 : vector<2x32xf32>
    %111 = math.tanh %108 : vector<2x32xf32>
    %112 = vector.broadcast %1 : f32 to vector<2x32xf32>
    %113 = arith.mulf %112, %111 : vector<2x32xf32>
    %114 = arith.addf %110, %113 : vector<2x32xf32>
    %c0_63 = arith.constant 0 : index
    %c0_64 = arith.constant 0 : index
    %115 = vector.load %arg6[%c0_63, %c0_64] : memref<2x32xf32, #tpu.memory_space<vmem>>, vector<2x32xf32>
    tpu.vector_store %arg6[%c0_63, %c0_64], %114 {strides = array<i32>} : memref<2x32xf32, #tpu.memory_space<vmem>>, vector<2x32xf32>,
    %c0_65 = arith.constant 0 : index
    %116 = arith.index_cast %98 : i32 to index
    %c0_66 = arith.constant 0 : index
    %c0_67 = arith.constant 0 : index
    %117 = vector.load %arg5[%c0_65, %116, %c0_66, %c0_67] : memref<1x8x2x32xf32, #tpu.memory_space<vmem>>, vector<1x1x2x32xf32>
    %118 = vector.shape_cast %117 : vector<1x1x2x32xf32> to vector<2x32xf32>
    %119 = vector.shape_cast %114 : vector<2x32xf32> to vector<1x1x2x32xf32>
    tpu.vector_store %arg5[%c0_65, %116, %c0_66, %c0_67], %119 {strides = array<i32>} : memref<1x8x2x32xf32, #tpu.memory_space<vmem>>, vector<1x1x2x32xf32>,
    %c4_i32 = arith.constant 4 : i32
    %c2_i32_68 = arith.constant 2 : i32
    %120 = arith.muli %c2_i32_68, %c4_i32 : i32
    %c7_i32_69 = arith.constant 7 : i32
    %121 = arith.subi %c7_i32_69, %120 : i32
    %122 = arith.muli %arg0, %121 : i32
    %123 = arith.addi %c4_i32, %122 : i32
    %c0_70 = arith.constant 0 : index
    %c0_71 = arith.constant 0 : index
    %124 = vector.load %arg6[%c0_70, %c0_71] : memref<2x32xf32, #tpu.memory_space<vmem>>, vector<2x32xf32>
    %c0_72 = arith.constant 0 : index
    %125 = arith.index_cast %123 : i32 to index
    %c0_73 = arith.constant 0 : index
    %c0_74 = arith.constant 0 : index
    %126 = vector.load %arg5[%c0_72, %125, %c0_73, %c0_74] : memref<1x8x2x32xf32, #tpu.memory_space<vmem>>, vector<1x1x2x32xf32>
    %127 = vector.shape_cast %126 : vector<1x1x2x32xf32> to vector<2x32xf32>
    %128 = vector.extract_strided_slice %124 {offsets = [0, 31], sizes = [2, 1], strides = [1, 1]} : vector<2x32xf32> to vector<2x1xf32>
    %129 = vector.extract_strided_slice %124 {offsets = [0, 0], sizes = [2, 31], strides = [1, 1]} : vector<2x32xf32> to vector<2x31xf32>
    %130 = tpu.concatenate %128, %129 in 1 : vector<2x1xf32>, vector<2x31xf32> -> vector<2x32xf32>
    %131 = vector.broadcast %3 : f32 to vector<2x32xf32>
    %132 = arith.mulf %131, %130 : vector<2x32xf32>
    %133 = arith.addf %127, %132 : vector<2x32xf32>
    %134 = vector.broadcast %4 : f32 to vector<2x32xf32>
    %135 = arith.mulf %134, %124 : vector<2x32xf32>
    %136 = math.tanh %133 : vector<2x32xf32>
    %137 = vector.broadcast %1 : f32 to vector<2x32xf32>
    %138 = arith.mulf %137, %136 : vector<2x32xf32>
    %139 = arith.addf %135, %138 : vector<2x32xf32>
    %c0_75 = arith.constant 0 : index
    %c0_76 = arith.constant 0 : index
    %140 = vector.load %arg6[%c0_75, %c0_76] : memref<2x32xf32, #tpu.memory_space<vmem>>, vector<2x32xf32>
    tpu.vector_store %arg6[%c0_75, %c0_76], %139 {strides = array<i32>} : memref<2x32xf32, #tpu.memory_space<vmem>>, vector<2x32xf32>,
    %c0_77 = arith.constant 0 : index
    %141 = arith.index_cast %123 : i32 to index
    %c0_78 = arith.constant 0 : index
    %c0_79 = arith.constant 0 : index
    %142 = vector.load %arg5[%c0_77, %141, %c0_78, %c0_79] : memref<1x8x2x32xf32, #tpu.memory_space<vmem>>, vector<1x1x2x32xf32>
    %143 = vector.shape_cast %142 : vector<1x1x2x32xf32> to vector<2x32xf32>
    %144 = vector.shape_cast %139 : vector<2x32xf32> to vector<1x1x2x32xf32>
    tpu.vector_store %arg5[%c0_77, %141, %c0_78, %c0_79], %144 {strides = array<i32>} : memref<1x8x2x32xf32, #tpu.memory_space<vmem>>, vector<1x1x2x32xf32>,
    %c5_i32 = arith.constant 5 : i32
    %c2_i32_80 = arith.constant 2 : i32
    %145 = arith.muli %c2_i32_80, %c5_i32 : i32
    %c7_i32_81 = arith.constant 7 : i32
    %146 = arith.subi %c7_i32_81, %145 : i32
    %147 = arith.muli %arg0, %146 : i32
    %148 = arith.addi %c5_i32, %147 : i32
    %c0_82 = arith.constant 0 : index
    %c0_83 = arith.constant 0 : index
    %149 = vector.load %arg6[%c0_82, %c0_83] : memref<2x32xf32, #tpu.memory_space<vmem>>, vector<2x32xf32>
    %c0_84 = arith.constant 0 : index
    %150 = arith.index_cast %148 : i32 to index
    %c0_85 = arith.constant 0 : index
    %c0_86 = arith.constant 0 : index
    %151 = vector.load %arg5[%c0_84, %150, %c0_85, %c0_86] : memref<1x8x2x32xf32, #tpu.memory_space<vmem>>, vector<1x1x2x32xf32>
    %152 = vector.shape_cast %151 : vector<1x1x2x32xf32> to vector<2x32xf32>
    %153 = vector.extract_strided_slice %149 {offsets = [0, 31], sizes = [2, 1], strides = [1, 1]} : vector<2x32xf32> to vector<2x1xf32>
    %154 = vector.extract_strided_slice %149 {offsets = [0, 0], sizes = [2, 31], strides = [1, 1]} : vector<2x32xf32> to vector<2x31xf32>
    %155 = tpu.concatenate %153, %154 in 1 : vector<2x1xf32>, vector<2x31xf32> -> vector<2x32xf32>
    %156 = vector.broadcast %3 : f32 to vector<2x32xf32>
    %157 = arith.mulf %156, %155 : vector<2x32xf32>
    %158 = arith.addf %152, %157 : vector<2x32xf32>
    %159 = vector.broadcast %4 : f32 to vector<2x32xf32>
    %160 = arith.mulf %159, %149 : vector<2x32xf32>
    %161 = math.tanh %158 : vector<2x32xf32>
    %162 = vector.broadcast %1 : f32 to vector<2x32xf32>
    %163 = arith.mulf %162, %161 : vector<2x32xf32>
    %164 = arith.addf %160, %163 : vector<2x32xf32>
    %c0_87 = arith.constant 0 : index
    %c0_88 = arith.constant 0 : index
    %165 = vector.load %arg6[%c0_87, %c0_88] : memref<2x32xf32, #tpu.memory_space<vmem>>, vector<2x32xf32>
    tpu.vector_store %arg6[%c0_87, %c0_88], %164 {strides = array<i32>} : memref<2x32xf32, #tpu.memory_space<vmem>>, vector<2x32xf32>,
    %c0_89 = arith.constant 0 : index
    %166 = arith.index_cast %148 : i32 to index
    %c0_90 = arith.constant 0 : index
    %c0_91 = arith.constant 0 : index
    %167 = vector.load %arg5[%c0_89, %166, %c0_90, %c0_91] : memref<1x8x2x32xf32, #tpu.memory_space<vmem>>, vector<1x1x2x32xf32>
    %168 = vector.shape_cast %167 : vector<1x1x2x32xf32> to vector<2x32xf32>
    %169 = vector.shape_cast %164 : vector<2x32xf32> to vector<1x1x2x32xf32>
    tpu.vector_store %arg5[%c0_89, %166, %c0_90, %c0_91], %169 {strides = array<i32>} : memref<1x8x2x32xf32, #tpu.memory_space<vmem>>, vector<1x1x2x32xf32>,
    %c6_i32 = arith.constant 6 : i32
    %c2_i32_92 = arith.constant 2 : i32
    %170 = arith.muli %c2_i32_92, %c6_i32 : i32
    %c7_i32_93 = arith.constant 7 : i32
    %171 = arith.subi %c7_i32_93, %170 : i32
    %172 = arith.muli %arg0, %171 : i32
    %173 = arith.addi %c6_i32, %172 : i32
    %c0_94 = arith.constant 0 : index
    %c0_95 = arith.constant 0 : index
    %174 = vector.load %arg6[%c0_94, %c0_95] : memref<2x32xf32, #tpu.memory_space<vmem>>, vector<2x32xf32>
    %c0_96 = arith.constant 0 : index
    %175 = arith.index_cast %173 : i32 to index
    %c0_97 = arith.constant 0 : index
    %c0_98 = arith.constant 0 : index
    %176 = vector.load %arg5[%c0_96, %175, %c0_97, %c0_98] : memref<1x8x2x32xf32, #tpu.memory_space<vmem>>, vector<1x1x2x32xf32>
    %177 = vector.shape_cast %176 : vector<1x1x2x32xf32> to vector<2x32xf32>
    %178 = vector.extract_strided_slice %174 {offsets = [0, 31], sizes = [2, 1], strides = [1, 1]} : vector<2x32xf32> to vector<2x1xf32>
    %179 = vector.extract_strided_slice %174 {offsets = [0, 0], sizes = [2, 31], strides = [1, 1]} : vector<2x32xf32> to vector<2x31xf32>
    %180 = tpu.concatenate %178, %179 in 1 : vector<2x1xf32>, vector<2x31xf32> -> vector<2x32xf32>
    %181 = vector.broadcast %3 : f32 to vector<2x32xf32>
    %182 = arith.mulf %181, %180 : vector<2x32xf32>
    %183 = arith.addf %177, %182 : vector<2x32xf32>
    %184 = vector.broadcast %4 : f32 to vector<2x32xf32>
    %185 = arith.mulf %184, %174 : vector<2x32xf32>
    %186 = math.tanh %183 : vector<2x32xf32>
    %187 = vector.broadcast %1 : f32 to vector<2x32xf32>
    %188 = arith.mulf %187, %186 : vector<2x32xf32>
    %189 = arith.addf %185, %188 : vector<2x32xf32>
    %c0_99 = arith.constant 0 : index
    %c0_100 = arith.constant 0 : index
    %190 = vector.load %arg6[%c0_99, %c0_100] : memref<2x32xf32, #tpu.memory_space<vmem>>, vector<2x32xf32>
    tpu.vector_store %arg6[%c0_99, %c0_100], %189 {strides = array<i32>} : memref<2x32xf32, #tpu.memory_space<vmem>>, vector<2x32xf32>,
    %c0_101 = arith.constant 0 : index
    %191 = arith.index_cast %173 : i32 to index
    %c0_102 = arith.constant 0 : index
    %c0_103 = arith.constant 0 : index
    %192 = vector.load %arg5[%c0_101, %191, %c0_102, %c0_103] : memref<1x8x2x32xf32, #tpu.memory_space<vmem>>, vector<1x1x2x32xf32>
    %193 = vector.shape_cast %192 : vector<1x1x2x32xf32> to vector<2x32xf32>
    %194 = vector.shape_cast %189 : vector<2x32xf32> to vector<1x1x2x32xf32>
    tpu.vector_store %arg5[%c0_101, %191, %c0_102, %c0_103], %194 {strides = array<i32>} : memref<1x8x2x32xf32, #tpu.memory_space<vmem>>, vector<1x1x2x32xf32>,
    %c7_i32_104 = arith.constant 7 : i32
    %c2_i32_105 = arith.constant 2 : i32
    %195 = arith.muli %c2_i32_105, %c7_i32_104 : i32
    %c7_i32_106 = arith.constant 7 : i32
    %196 = arith.subi %c7_i32_106, %195 : i32
    %197 = arith.muli %arg0, %196 : i32
    %198 = arith.addi %c7_i32_104, %197 : i32
    %c0_107 = arith.constant 0 : index
    %c0_108 = arith.constant 0 : index
    %199 = vector.load %arg6[%c0_107, %c0_108] : memref<2x32xf32, #tpu.memory_space<vmem>>, vector<2x32xf32>
    %c0_109 = arith.constant 0 : index
    %200 = arith.index_cast %198 : i32 to index
    %c0_110 = arith.constant 0 : index
    %c0_111 = arith.constant 0 : index
    %201 = vector.load %arg5[%c0_109, %200, %c0_110, %c0_111] : memref<1x8x2x32xf32, #tpu.memory_space<vmem>>, vector<1x1x2x32xf32>
    %202 = vector.shape_cast %201 : vector<1x1x2x32xf32> to vector<2x32xf32>
    %203 = vector.extract_strided_slice %199 {offsets = [0, 31], sizes = [2, 1], strides = [1, 1]} : vector<2x32xf32> to vector<2x1xf32>
    %204 = vector.extract_strided_slice %199 {offsets = [0, 0], sizes = [2, 31], strides = [1, 1]} : vector<2x32xf32> to vector<2x31xf32>
    %205 = tpu.concatenate %203, %204 in 1 : vector<2x1xf32>, vector<2x31xf32> -> vector<2x32xf32>
    %206 = vector.broadcast %3 : f32 to vector<2x32xf32>
    %207 = arith.mulf %206, %205 : vector<2x32xf32>
    %208 = arith.addf %202, %207 : vector<2x32xf32>
    %209 = vector.broadcast %4 : f32 to vector<2x32xf32>
    %210 = arith.mulf %209, %199 : vector<2x32xf32>
    %211 = math.tanh %208 : vector<2x32xf32>
    %212 = vector.broadcast %1 : f32 to vector<2x32xf32>
    %213 = arith.mulf %212, %211 : vector<2x32xf32>
    %214 = arith.addf %210, %213 : vector<2x32xf32>
    %c0_112 = arith.constant 0 : index
    %c0_113 = arith.constant 0 : index
    %215 = vector.load %arg6[%c0_112, %c0_113] : memref<2x32xf32, #tpu.memory_space<vmem>>, vector<2x32xf32>
    tpu.vector_store %arg6[%c0_112, %c0_113], %214 {strides = array<i32>} : memref<2x32xf32, #tpu.memory_space<vmem>>, vector<2x32xf32>,
    %c0_114 = arith.constant 0 : index
    %216 = arith.index_cast %198 : i32 to index
    %c0_115 = arith.constant 0 : index
    %c0_116 = arith.constant 0 : index
    %217 = vector.load %arg5[%c0_114, %216, %c0_115, %c0_116] : memref<1x8x2x32xf32, #tpu.memory_space<vmem>>, vector<1x1x2x32xf32>
    %218 = vector.shape_cast %217 : vector<1x1x2x32xf32> to vector<2x32xf32>
    %219 = vector.shape_cast %214 : vector<2x32xf32> to vector<1x1x2x32xf32>
    tpu.vector_store %arg5[%c0_114, %216, %c0_115, %c0_116], %219 {strides = array<i32>} : memref<1x8x2x32xf32, #tpu.memory_space<vmem>>, vector<1x1x2x32xf32>,
    %c8_i32 = arith.constant 8 : i32
    return
  }
  func.func @transform_0(%arg0: i32, %arg1: i32) -> (i32, i32, i32) {
    %c2_i32 = arith.constant 2 : i32
    %0 = arith.muli %c2_i32, %arg1 : i32
    %c0_i32 = arith.constant 0 : i32
    %1 = arith.subi %c0_i32, %0 : i32
    %2 = arith.muli %arg0, %1 : i32
    %3 = arith.addi %arg1, %2 : i32
    %c0_i32_0 = arith.constant 0 : i32
    %c0_i32_1 = arith.constant 0 : i32
    %c0_i32_2 = arith.constant 0 : i32
    return %3, %c0_i32_0, %c0_i32_1 : i32, i32, i32
  }
  func.func @transform_1(%arg0: i32, %arg1: i32) -> (i32, i32, i32) {
    %c0_i32 = arith.constant 0 : i32
    %c0_i32_0 = arith.constant 0 : i32
    %c0_i32_1 = arith.constant 0 : i32
    return %arg0, %c0_i32, %c0_i32_0 : i32, i32, i32
  }
  func.func @transform_2(%arg0: i32, %arg1: i32) -> (i32, i32, i32) {
    %c0_i32 = arith.constant 0 : i32
    %c0_i32_0 = arith.constant 0 : i32
    %c0_i32_1 = arith.constant 0 : i32
    return %arg0, %c0_i32, %c0_i32_0 : i32, i32, i32
  }
  func.func @transform_3(%arg0: i32, %arg1: i32) -> (i32, i32, i32, i32) {
    %c2_i32 = arith.constant 2 : i32
    %0 = arith.muli %c2_i32, %arg1 : i32
    %c0_i32 = arith.constant 0 : i32
    %1 = arith.subi %c0_i32, %0 : i32
    %2 = arith.muli %arg0, %1 : i32
    %3 = arith.addi %arg1, %2 : i32
    %c0_i32_0 = arith.constant 0 : i32
    %c0_i32_1 = arith.constant 0 : i32
    %c0_i32_2 = arith.constant 0 : i32
    return %arg0, %3, %c0_i32_0, %c0_i32_1 : i32, i32, i32, i32
  }
}

</mosaic_0001>

<bundles_post_ra>
// kernel: tpu_custom_call.1
= control target key start
LH: loop header
LB: loop body
LE: loop exit
PB: predicated region body
PF: predicated region fallthrough
CT: control target
= control target key end

     0   :  { %8 = vsyncpa [#allocation4], 0  ;;  %s1225_s0 = inlined_call_operand.vmem [shape: f32[8,2,4], index: 0, kind: input, shape index: {}]   ;;  %s1226_s1 = inlined_call_operand.vmem [shape: f32[2,4,32], index: 1, kind: input, shape index: {}]   ;;  %s1227_s2 = inlined_call_operand.vmem [shape: f32[2,1,32], index: 2, kind: input, shape index: {}]   ;;  %s1228_s3 = inlined_call_operand.hbm [shape: f32[2,8,2,32], index: 3, kind: output, shape index: {}]  }
   0x1   :  { %10 = vsyncpa [#allocation4 + $0x1], 0  ;;  %s997_s12 = smov 0   ;;  %s999_s13 = smov 0  }
   0x2   :  { %s1001_s14 = smov 0   ;;  %s1003_s15 = smov 0  }
   0x3   :  { %s1005_s16 = smov 0   ;;  %s1007_s17 = smov 0  }
   0x4 LB: > { %s767_s18 = sadd.s32 4294967295, %s968_s17   ;;  %s768_s19 = sadd.s32 4294967294, %s968_s17   ;;  %s968_s17 = sphi %s1007_s17, %s16_s17   ;;  %s964_s16 = sphi %s1005_s16, %s1235_s16   ;;  %s960_s15 = sphi %s1003_s15, %s1234_s15   ;;  %s956_s14 = sphi %s1001_s14, %s1233_s14   ;;  %s952_s13 = sphi %s999_s13, %s1232_s13   ;;  %s948_s12 = sphi %s997_s12, %s1231_s12  }
   0x5   : > { %s28_s20 = sadd.s32 1, %s964_s16  ;;  %s131_s21 = sadd.s32 1, %s956_s14 }
   0x6   : > { %p30_p0 = scmp.ge.s32.totalorder %s28_s20, 2  ;;  %p141_p1 = scmp.ne.s32.totalorder %s956_s14, %s952_s13 }
   0x7   : > { %p142_p2 = scmp.eq.s32.totalorder %s767_s18, 1  ;;  %p147_p3 = scmp.ne.s32.totalorder %s952_s13, %s948_s12 }
   0x8   : > { %s1237_s20 = smov (%p30_p0, %s28_s20), 0  ;;  %p148_p5 = scmp.eq.s32.totalorder %s768_s19, 1 }
   0x9   : > { %p1037_p4 = por %p142_p2, %p141_p1  ;;  %s126_s23 = ssub.s32 %s964_s16, %s1237_s20 }
   0xa   : > { %p772_p6 = scmp.ge.s32.totalorder %s968_s17, 1  ;;  %p129_p7 = scmp.eq.s32.totalorder %s126_s23, 0 }
   0xb   : > { %p1044_p8 = por %p148_p5, %p147_p3  ;;  %p196_p9 = scmp.lt.s32.totalorder %s968_s17, 3 }
   0xc   : > { %s1050_s25 = scalar_select %p129_p7, %s956_s14, %s131_s21  }
   0xd   : > { %p197_p10 = pnand %p772_p6, %p196_p9 }
   0xe   : > { %p245_p11 = scmp.lt.s32.totalorder (!%p197_p10), %s960_s15, 1  ;;  %v263_v0 = vld [vmem:[%s1225_s0] sm:$0x3] (!%p197_p10)  ;;  %v264_v1 = vld [vmem:[%s1225_s0 + $0x2] sm:$0x3] (!%p197_p10)  ;;  %v291_v2 = vlaneseq (!%p197_p10)  ;;  %vm335_vm0 = vcmask (!%p197_p10), 1043456  }
   0xf   : > { %200 = sbr.rel (%p197_p10) target bundleno = 1265 (0x4f1), region = 32  ;;  %v265_v3 = vld [vmem:[%s1225_s0 + $0x4] sm:$0x3] (!%p197_p10)  ;;  %v266_v4 = vld [vmem:[%s1225_s0 + $0x6] sm:$0x3] (!%p197_p10)  ;;  %v286_v9 = vcombine.low (!%p197_p10), %v263_v0, %v264_v1  ;;  %vm261_vm1 = vcmask (!%p197_p10), 254976  }
  0x10   : > { %v970_v5 = vmov (!%p197_p10), 1983009808   ;;  %v292_v7 = vshrl.u32 (!%p197_p10), %v291_v2, 7  ;;  %v267_v8 = vld [vmem:[%s1225_s0 + $0x8] sm:$0x3] (!%p197_p10)  ;;  %v287_v10 = vcombine.low (!%p197_p10), %v265_v3, %v266_v4  ;;  %v971_v19 = vmov (!%p197_p10), 0.0  }
  0x11   : > { %v289_v6 = vunpack.c.l.s4 (!%p197_p10), %v970_v5  ;;  %v268_v11 = vld [vmem:[%s1225_s0 + $0xa] sm:$0x3] (!%p197_p10)  ;;  %v269_v12 = vld [vmem:[%s1225_s0 + $0xc] sm:$0x3] (!%p197_p10)  ;;  %v270_v13 = vld [vmem:[%s1225_s0 + $0xe] sm:$0x3] (!%p197_p10) }
  0x12   : > { %v303_v15 = vcombine.low (!%p197_p10), %v267_v8, %v268_v11  ;;  %v304_v16 = vcombine.low (!%p197_p10), %v269_v12, %v270_v13  ;;  %262 = vst.msk [vmem:[#allocation2] sm:$0x3] (!%p197_p10), %vm261_vm1, %v971_v19  ;;  %vm330_vm2 = vcmask (!%p197_p10), 31744   ;;  %s972_s30 = smov (!%p197_p10), 97   ;;  %s973_s4 = smov (!%p197_p10), 1   ;;  %vm479_vm3 = vcmask (!%p197_p10), 7168  }
  0x13   : > { %v290_v14 = vunpack.c.0.s8 (!%p197_p10), %v289_v6  ;;  %s228_s9 = sand.u32 (!%p197_p10), 1, %s952_s13   ;;  %s780_s19 = smul.u32 (!%p197_p10), 10, %s960_s15 }
  0x14   : > { %s773_s10 = sshll.u32 (!%p197_p10), %s228_s9, 4  ;;  %s783_s23 = smul.u32 (!%p197_p10), 6, %s960_s15 }
  0x15   : > { %v293_v18 = vsub.s32 (!%p197_p10), %v290_v14, %v292_v7  ;;  %s1096_s11 = scalar_lea.vmem (!%p197_p10), [#allocation3], %s773_s10  ;;  %s786_s27 = sshll.u32 (!%p197_p10), %s960_s15, 1 }
  0x16   : > { %s1066_s7 = scalar_select %p245_p11, %s960_s15, 1 }
  0x17   : > { %v294_v20 = vrot.slane %v286_v9, %v293_v18  ;;  %v301_v21 = vrot.slane %v287_v10, %v293_v18  ;;  %v311_v22 = vrot.slane %v303_v15, %v293_v18  ;;  %v318_v23 = vrot.slane %v304_v16, %v293_v18  ;;  %s691_s21 = scalar_lea.vmem %s1096_s11, %s780_s19 [#allocation3]  ;;  %s698_s28 = scalar_lea.vmem %s1096_s11, %s786_s27 [#allocation3] }
  0x18   : > { %s774_s26 = sshll.u32 %s1066_s7, 2  ;;  %s251_s8 = scalar_lea.vmem %s1227_s2, %s1066_s7 }
  0x19   : > { %s248_s29 = scalar_lea.vmem %s1226_s1, %s774_s26  ;;  %v302_v24 = vcombine.low %v294_v20, %v301_v21  ;;  %v319_v25 = vcombine.low %v311_v22, %v318_v23  ;;  %v468_v26 = vld [vmem:[#allocation2] sm:$0x3]  ;;  %v775_v27 = vld [vmem:[%s251_s8] ss:$0 sm:$0xff]  ;;  %s779_s7 = smul.u32 14, %s960_s15 }
  0x1a   : > { %v271_v17 = vld [vmem:[%s248_s29] sm:$0xf]  ;;  %473 = vrot.lane.b32.xlu0 %v468_v26, %s972_s30  ;;  %v320_v28 = vcombine.low %v775_v27, %v775_v27  ;;  %v482_v50 = vmul.f32 0.0, %v468_v26  ;;  %s695_s26 = scalar_lea.vmem %s1096_s11, %s783_s23 [#allocation3]  ;;  %s546_s29 = ssub.s32 4, %s960_s15 }
  0x1b   : > { %808 = vmatprep.subr.msk.mxu0 %vm335_vm0, %v271_v17  ;;  %810 = vmatprep.mubr.msk.f32.mxu0 %vm330_vm2, %v302_v24  ;;  %s470_s18 = scalar_lea.vmem %s1096_s11, %s779_s7 [#allocation3]  ;;  %s789_s5 = sshll.u32 %s546_s29, 1 }
  0x1c   : > { %809 = vmatpush3.msk.msra.mxu0 %vm335_vm0, %v271_v17  ;;  %v327_v29 = vrot.slane %v320_v28, %v293_v18  ;;  %s549_s6 = scalar_lea.vmem %s1096_s11, %s789_s5 [#allocation3]  ;;  %s790_s8 = smul.u32 4294967290, %s960_s15 }
  0x1d   : > { %811 = vmatmul.mubr.msk.f32.vlgmr.msra.gmra.mrb[0].mxu0 %vm330_vm2, %v319_v25  ;;  %s793_s7 = smul.u32 4294967286, %s960_s15  ;;  %s804_s23 = sshll.u32 %s960_s15, 8 }
  0x1e   : > { %476 = vrot.lane.b32.xlu0 %v468_v26, %s973_s4  ;;  %v328_v30 = vcombine.low %v327_v29, %v327_v29  ;;  %s704_s10 = scalar_lea.vmem %s1096_s11, %s790_s8 [#allocation3]  ;;  %s796_s19 = smul.u32 4294967282, %s960_s15 }
  0x1f   : > { %s1179_s15 = scalar_lea.sflag [#allocation4], %s228_s9 }
  0x8c   : > { %v474_v45 = vpop.permute.xlu0 %473 }
  0x90   : > { %v477_v46 = vpop.permute.xlu0 %476 }
  0x91   : > { %v480_v48 = vsel %vm479_vm3, %v474_v45, %v477_v46 }
  0xf0   : > { %v812_v31 = vpop.f32.mrb[0].mxu0 }
  0xf1   : > { %v411_v32 = vadd.f32 %v812_v31, %v328_v30  ;;  %v405_v33 = vpop.f32.mrb[1].mxu0 }
  0xf2   : > { %v406_v34 = vadd.f32 %v405_v33, %v328_v30 }
  0xf3   : > { %v433_v35 = vcombine.high %v411_v32, %v411_v32  ;;  %v440_v36 = vrot.slane %v411_v32, %v293_v18 }
  0xf4   : > { %v416_v37 = vcombine.high %v406_v34, %v406_v34  ;;  %v423_v38 = vrot.slane %v406_v34, %v293_v18 }
  0xf5   : > { %v447_v39 = vrot.slane %v433_v35, %v293_v18  ;;  %v448_v40 = vcombine.high %v440_v36, %v440_v36  ;;  %463 = vst.msk [vmem:[%s1096_s11 + $0x8] sm:$0x3] %vm261_vm1, %v440_v36 }
  0xf6   : > { %v430_v41 = vrot.slane %v416_v37, %v293_v18  ;;  %v431_v42 = vcombine.high %v423_v38, %v423_v38  ;;  %459 = vst.msk [vmem:[%s1096_s11] sm:$0x3] %vm261_vm1, %v423_v38 }
  0xf7   : > { %v449_v43 = vcombine.high %v447_v39, %v447_v39  ;;  %464 = vst.msk [vmem:[%s1096_s11 + $0xa] sm:$0x3] %vm261_vm1, %v448_v40  ;;  %465 = vst.msk [vmem:[%s1096_s11 + $0xc] sm:$0x3] %vm261_vm1, %v447_v39 }
  0xf8   : > { %v432_v44 = vcombine.high %v430_v41, %v430_v41  ;;  %460 = vst.msk [vmem:[%s1096_s11 + $0x2] sm:$0x3] %vm261_vm1, %v431_v42  ;;  %461 = vst.msk [vmem:[%s1096_s11 + $0x4] sm:$0x3] %vm261_vm1, %v430_v41 }
  0xf9   : > { %466 = vst.msk [vmem:[%s1096_s11 + $0xe] sm:$0x3] %vm261_vm1, %v449_v43 }
  0xfa   : > { %462 = vst.msk [vmem:[%s1096_s11 + $0x6] sm:$0x3] %vm261_vm1, %v432_v44 }
 0x101   : > { %v471_v47 = vld [vmem:[%s470_s18] sm:$0x3] }
 0x102   : > { %v481_v49 = vadd.f32 %v480_v48, %v471_v47 }
 0x104   : > { %874 = vtanh.f32 %v481_v49 }
 0x10e   : > { %v875_v51 = vpop.eup %874 }
 0x10f   : > { %v484_v52 = vadd.f32 %v875_v51, %v482_v50 }
 0x111   : > { %485 = vst.msk [vmem:[#allocation2] sm:$0x3] %vm261_vm1, %v484_v52  ;;  %486 = vst.msk [vmem:[%s470_s18] sm:$0x3] %vm261_vm1, %v484_v52  ;;  %s708_s18 = scalar_lea.vmem %s1096_s11, %s793_s7 [#allocation3] }
 0x118   : > { %v489_v53 = vld [vmem:[#allocation2] sm:$0x3]  ;;  %v781_v56 = vld [vmem:[%s691_s21 + $0x2] sm:$0x3] }
 0x119   : > { %494 = vrot.lane.b32.xlu1 %v489_v53, %s972_s30  ;;  %v502_v59 = vmul.f32 0.0, %v489_v53 }
 0x11d   : > { %497 = vrot.lane.b32.xlu1 %v489_v53, %s973_s4 }
 0x18b   : > { %v495_v54 = vpop.permute.xlu1 %494 }
 0x18f   : > { %v498_v55 = vpop.permute.xlu1 %497 }
 0x190   : > { %v500_v57 = vsel %vm479_vm3, %v495_v54, %v498_v55 }
 0x191   : > { %v501_v58 = vadd.f32 %v781_v56, %v500_v57 }
 0x193   : > { %876 = vtanh.f32 %v501_v58 }
 0x19d   : > { %v877_v60 = vpop.eup %876 }
 0x19e   : > { %v504_v61 = vadd.f32 %v877_v60, %v502_v59 }
 0x1a0   : > { %505 = vst.msk [vmem:[#allocation2] sm:$0x3] %vm261_vm1, %v504_v61  ;;  %782 = vst.msk [vmem:[%s691_s21 + $0x2] sm:$0x3] %vm261_vm1, %v504_v61  ;;  %s712_s21 = scalar_lea.vmem %s1096_s11, %s796_s19 [#allocation3] }
 0x1a7   : > { %v509_v62 = vld [vmem:[#allocation2] sm:$0x3]  ;;  %v784_v1 = vld [vmem:[%s695_s26 + $0x4] sm:$0x3] }
 0x1a8   : > { %517 = vrot.lane.b32.xlu1 %v509_v62, %s973_s4  ;;  %514 = vrot.lane.b32.xlu0 %v509_v62, %s972_s30  ;;  %v522_v4 = vmul.f32 0.0, %v509_v62 }
 0x21a   : > { %v518_v63 = vpop.permute.xlu1 %517  ;;  %v515_v0 = vpop.permute.xlu0 %514 }
 0x21b   : > { %v520_v2 = vsel %vm479_vm3, %v515_v0, %v518_v63 }
 0x21c   : > { %v521_v3 = vadd.f32 %v784_v1, %v520_v2 }
 0x21e   : > { %878 = vtanh.f32 %v521_v3 }
 0x228   : > { %v879_v5 = vpop.eup %878 }
 0x229   : > { %v524_v6 = vadd.f32 %v879_v5, %v522_v4 }
 0x22b   : > { %525 = vst.msk [vmem:[#allocation2] sm:$0x3] %vm261_vm1, %v524_v6  ;;  %785 = vst.msk [vmem:[%s695_s26 + $0x4] sm:$0x3] %vm261_vm1, %v524_v6  ;;  %s645_s26 = sshll.u32 %s1096_s11, 4  ;;  %s974_s11 = smov [#allocation3]   ;;  %s1173_s26 = int_to_ptr.vmem [resolvable:$true] %s645_s26 }
 0x22c   : > { %s894_s29 = sshll.u32 %s974_s11, 4  ;;  %s895_s29 = int_to_ptr.vmem [resolvable:$false] %s894_s29 }
 0x22d   : > { %s896_s5 = scalar_lea.vmem %s895_s29, 512  ;;  %p897_p1 = scmp.lt.s32.totalorder %s1173_s26, %s895_s29 }
 0x232   : > { %v528_v7 = vld [vmem:[#allocation2] sm:$0x3]  ;;  %v787_v10 = vld [vmem:[%s698_s28 + $0x6] sm:$0x3] }
 0x233   : > { %536 = vrot.lane.b32.xlu1 %v528_v7, %s973_s4  ;;  %533 = vrot.lane.b32.xlu0 %v528_v7, %s972_s30  ;;  %v541_v13 = vmul.f32 0.0, %v528_v7 }
 0x2a5   : > { %v537_v8 = vpop.permute.xlu1 %536  ;;  %v534_v9 = vpop.permute.xlu0 %533 }
 0x2a6   : > { %v539_v11 = vsel %vm479_vm3, %v534_v9, %v537_v8 }
 0x2a7   : > { %v540_v12 = vadd.f32 %v787_v10, %v539_v11 }
 0x2a9   : > { %880 = vtanh.f32 %v540_v12 }
 0x2b3   : > { %v881_v14 = vpop.eup %880 }
 0x2b4   : > { %v543_v15 = vadd.f32 %v881_v14, %v541_v13 }
 0x2b6   : > { %544 = vst.msk [vmem:[#allocation2] sm:$0x3] %vm261_vm1, %v543_v15  ;;  %788 = vst.msk [vmem:[%s698_s28 + $0x6] sm:$0x3] %vm261_vm1, %v543_v15 }
 0x2bd   : > { %v547_v16 = vld [vmem:[#allocation2] sm:$0x3]  ;;  %v550_v19 = vld [vmem:[%s549_s6] sm:$0x3] }
 0x2be   : > { %555 = vrot.lane.b32.xlu1 %v547_v16, %s973_s4  ;;  %552 = vrot.lane.b32.xlu0 %v547_v16, %s972_s30  ;;  %v560_v22 = vmul.f32 0.0, %v547_v16 }
 0x330   : > { %v556_v17 = vpop.permute.xlu1 %555  ;;  %v553_v18 = vpop.permute.xlu0 %552 }
 0x331   : > { %v558_v20 = vsel %vm479_vm3, %v553_v18, %v556_v17 }
 0x332   : > { %v559_v21 = vadd.f32 %v558_v20, %v550_v19 }
 0x334   : > { %882 = vtanh.f32 %v559_v21 }
 0x33e   : > { %v883_v23 = vpop.eup %882 }
 0x33f   : > { %v562_v24 = vadd.f32 %v883_v23, %v560_v22 }
 0x341   : > { %563 = vst.msk [vmem:[#allocation2] sm:$0x3] %vm261_vm1, %v562_v24  ;;  %564 = vst.msk [vmem:[%s549_s6] sm:$0x3] %vm261_vm1, %v562_v24 }
 0x348   : > { %v567_v25 = vld [vmem:[#allocation2] sm:$0x3]  ;;  %v791_v28 = vld [vmem:[%s704_s10 + $0xa] sm:$0x3] }
 0x349   : > { %575 = vrot.lane.b32.xlu1 %v567_v25, %s973_s4  ;;  %572 = vrot.lane.b32.xlu0 %v567_v25, %s972_s30  ;;  %v580_v31 = vmul.f32 0.0, %v567_v25 }
 0x3bb   : > { %v576_v26 = vpop.permute.xlu1 %575  ;;  %v573_v27 = vpop.permute.xlu0 %572 }
 0x3bc   : > { %v578_v29 = vsel %vm479_vm3, %v573_v27, %v576_v26 }
 0x3bd   : > { %v579_v30 = vadd.f32 %v791_v28, %v578_v29 }
 0x3bf   : > { %884 = vtanh.f32 %v579_v30 }
 0x3c9   : > { %v885_v32 = vpop.eup %884 }
 0x3ca   : > { %v582_v33 = vadd.f32 %v885_v32, %v580_v31 }
 0x3cc   : > { %583 = vst.msk [vmem:[#allocation2] sm:$0x3] %vm261_vm1, %v582_v33  ;;  %792 = vst.msk [vmem:[%s704_s10 + $0xa] sm:$0x3] %vm261_vm1, %v582_v33 }
 0x3d3   : > { %v587_v34 = vld [vmem:[#allocation2] sm:$0x3]  ;;  %v794_v37 = vld [vmem:[%s708_s18 + $0xc] sm:$0x3] }
 0x3d4   : > { %595 = vrot.lane.b32.xlu1 %v587_v34, %s973_s4  ;;  %592 = vrot.lane.b32.xlu0 %v587_v34, %s972_s30  ;;  %v600_v40 = vmul.f32 0.0, %v587_v34 }
 0x446   : > { %v596_v35 = vpop.permute.xlu1 %595  ;;  %v593_v36 = vpop.permute.xlu0 %592 }
 0x447   : > { %v598_v38 = vsel %vm479_vm3, %v593_v36, %v596_v35 }
 0x448   : > { %v599_v39 = vadd.f32 %v794_v37, %v598_v38 }
 0x44a   : > { %886 = vtanh.f32 %v599_v39 }
 0x454   : > { %v887_v41 = vpop.eup %886 }
 0x455   : > { %v602_v42 = vadd.f32 %v887_v41, %v600_v40 }
 0x457   : > { %603 = vst.msk [vmem:[#allocation2] sm:$0x3] %vm261_vm1, %v602_v42  ;;  %795 = vst.msk [vmem:[%s708_s18 + $0xc] sm:$0x3] %vm261_vm1, %v602_v42 }
 0x45e   : > { %v607_v43 = vld [vmem:[#allocation2] sm:$0x3]  ;;  %v797_v46 = vld [vmem:[%s712_s21 + $0xe] sm:$0x3] }
 0x45f   : > { %615 = vrot.lane.b32.xlu1 %v607_v43, %s973_s4  ;;  %612 = vrot.lane.b32.xlu0 %v607_v43, %s972_s30  ;;  %v620_v49 = vmul.f32 0.0, %v607_v43  ;;  %s1171_s4 = scalar_lea.hbm %s1228_s3, %s804_s23  ;;  %s890_s30 = scalar_lea.vmem %s1173_s26, 256 }
 0x460   : > { %p891_p12 = scmp.ne.s32.totalorder %s1173_s26, %s890_s30  ;;  %p898_p2 = scmp.lt.s32.totalorder %s896_s5, %s890_s30 }
 0x462   : > { %p892_p13 = pnand %p891_p12, %p1037_p4  ;;  %p899_p3 = por %p898_p2, %p897_p1 }
 0x464   : > { %p893_p0 = pneg %p892_p13 }
 0x466   : > { %p900_p5 = pnand %p899_p3, %p893_p0 }
 0x4d1   : > { %v616_v44 = vpop.permute.xlu1 %615  ;;  %v613_v45 = vpop.permute.xlu0 %612 }
 0x4d2   : > { %v618_v47 = vsel %vm479_vm3, %v613_v45, %v616_v44 }
 0x4d3   : > { %v619_v48 = vadd.f32 %v797_v46, %v618_v47 }
 0x4d5   : > { %888 = vtanh.f32 %v619_v48 }
 0x4df   : > { %v889_v50 = vpop.eup %888 }
 0x4e0   : > { %v622_v51 = vadd.f32 %v889_v50, %v620_v49 }
 0x4e2   : > { %623 = vst.msk [vmem:[#allocation2] sm:$0x3] %vm261_vm1, %v622_v51  ;;  %798 = vst.msk [vmem:[%s712_s21 + $0xe] sm:$0x3] %vm261_vm1, %v622_v51 }
 0x4e3   : > { %903 = shalt.err (!%p900_p5)
}
 0x4e4   : > { %s904_s9 = scalar_lea.hbm %s1171_s4, 256  ;;  %s908_s10 = scalar_lea.hbm %s1228_s3, 512 }
 0x4e5   : > { %p905_p6 = scmp.ne.s32.totalorder %s1171_s4, %s904_s9  ;;  %p909_p10 = scmp.lt.u32.totalorder %s1171_s4, %s1228_s3 }
 0x4e6   : > { %p910_p11 = scmp.lt.u32.totalorder %s908_s10, %s904_s9  ;;  %p912_p13 = scmp.lt.u32.totalorder %s904_s9, %s1171_s4 }
 0x4e7   : > { %p906_p7 = pnand %p905_p6, %p1037_p4 }
 0x4e8   : > { %p911_p12 = por %p910_p11, %p909_p10 }
 0x4e9   : > { %p907_p9 = pneg %p906_p7 }
 0x4ea   : > { %p913_p0 = por %p912_p13, %p911_p12 }
 0x4ec   : > { %p914_p1 = pnand %p913_p0, %p907_p9 }
 0x4ee   : > { %917 = shalt.err (!%p914_p1)
}
 0x4ef   : > { %s975_s19 = smov 32   ;;  %s976_s21 = smov 2  }
 0x4f0   : > { %813 = dma.vmem_to_hbm [thread:$0]  (%p1037_p4), %s1173_s26, 256, %s1171_s4, %s1179_s15, %s975_s19, %s975_s19, %s976_s21  }
 0x4f1 PF: > { %p819_p2 = scmp.ge.s32.totalorder %s968_s17, 2  ;;  %s660_s23 = sand.u32 1, %s948_s12  }
 0x4f2   : > { %s661_s27 = scalar_lea.sflag [#allocation4], %s660_s23 }
 0x4f3   : > { %p816_p3 = pnand %p819_p2, %p1044_p8 }
 0x4f5   : > { %943 = dma.done.wait (!%p816_p3), %s661_s27, 256  }
 0x4f6   : > { %945 = vsyncadd (!%p816_p3), %s661_s27, 4294967040  ;;  %s16_s17 = sadd.s32 1, %s968_s17   ;;  %s1231_s12 = smov %s952_s13 }
 0x4f7   : > { %p13_p5 = scmp.ge.s32.totalorder %s16_s17, 4   ;;  %s1232_s13 = smov %s956_s14 }
 0x4f8   : > { %s1233_s14 = smov %s1050_s25  ;;  %s1234_s15 = smov %s964_s16 }
 0x4f9   : > { %s1235_s16 = smov %s1237_s20  ;;  %15 = sbr.rel (!%p13_p5) target bundleno = 4 (0x4), region = 85 }
 0x500   :  { %666 = vsyncpa [#allocation4], 1 }
 0x501   :  { %668 = vsyncpa [#allocation4 + $0x1], 1 }

</bundles_post_ra>
